<compile_context>
chip_gen: v7x
topology: tpu7x:2x2x1
jax: 0.10.0
libtpu: 0.0.40
codegen_flags: <defaults>
</compile_context>

<pallas_src>
import jax
import jax.numpy as jnp
import numpy as np
from jax.experimental import pallas as pl
from jax.experimental.pallas import tpu as pltpu

SQRT_HALF = 0.70710678118
PREFIX = 3
LANE = 128
NEG_BIG = -1e30   # finite filler so padded components never win the min


def _round_up(x, m):
    return ((x + m - 1) // m) * m


def _pose_prior_kernel(theta_ref, w_ref, bias_ref, sel_ref, logw_ref, out_ref):
    # theta_ref: (TM, 72)      batch tile (pipelined through VMEM)
    # w_ref    : (72, L)       resident folded precisions (L = round_up(8*69,128) = 640)
    # bias_ref : (1, L)        resident folded -means @ W
    # sel_ref  : (L, 128)      resident block-diagonal ones selector
    # logw_ref : (1, 128)      logweights in cols 0..7, -1e30 elsewhere
    # out_ref  : (1, 1, TM)    lane-major output tile
    ll = jnp.dot(theta_ref[...], w_ref[...],
                 preferred_element_type=jnp.float32) + bias_ref[...]      # (TM, L)
    sq = ll * ll
    # Per-component squared sums on the MXU (replaces 8 XLU lane reductions).
    res = jnp.dot(sq, sel_ref[...],
                  preferred_element_type=jnp.float32) - logw_ref[...]     # (TM, 128)
    best = jnp.min(res, axis=-1, keepdims=True)                           # (TM, 1)
    # Lane-dense store: small XLU transpose (XLU has slack now).
    out_ref[...] = jnp.transpose(best).reshape(out_ref.shape)


def build_pose_prior_tables(means, precs, logweights):
    """Fold the GMM params into resident MXU operands. Build once, reuse per call."""
    means = jnp.asarray(means, jnp.float32)          # (g, p)
    precs = jnp.asarray(precs, jnp.float32)          # (g, p, p)
    logweights = jnp.asarray(logweights, jnp.float32)  # (g,)
    g, p = means.shape
    assert g <= LANE
    theta_dim = p + PREFIX
    lanes = _round_up(g * p, LANE)                   # 8*69 = 552 -> 640

    Pp = SQRT_HALF * precs                           # (g, p, p)
    b = -jnp.einsum('gp,gpq->gq', means, Pp)         # (g, p)

    # W[r, gi*p + c] = Pp[gi, r-PREFIX, c]; zero prefix rows (drops global rot
    # inside the matmul) and zero pad lanes (contribute 0 to the squared sum).
    Wg = jnp.transpose(Pp, (1, 0, 2)).reshape(p, g * p)        # (p, g*p)
    W = jnp.zeros((theta_dim, lanes), jnp.float32)
    W = W.at[PREFIX:PREFIX + p, :g * p].set(Wg)
    bias = jnp.zeros((1, lanes), jnp.float32).at[0, :g * p].set(b.reshape(-1))

    # Block-diagonal ones selector: column gi sums component gi's lanes.
    sel_np = np.zeros((lanes, LANE), np.float32)
    for gi in range(g):
        sel_np[gi * p:(gi + 1) * p, gi] = 1.0
    sel = jnp.asarray(sel_np)

    # logweight row: real values in cols 0..g-1, large-negative elsewhere so
    # (0 - NEG_BIG) = +1e30 never wins the min.
    logw_row = jnp.full((1, LANE), NEG_BIG, jnp.float32).at[0, :g].set(logweights)
    return W, bias, sel, logw_row


def max_mixture_pose_prior(theta, tables, *, tm=1024):
    """theta: (num, 72); tables: output of build_pose_prior_tables."""
    W, bias, sel, logw_row = tables
    theta = jnp.asarray(theta, jnp.float32)
    num, theta_dim = theta.shape
    assert theta_dim == W.shape[0], "theta width must match prefix + pose dim"
    lanes = W.shape[1]

    # ---- tile-size selection -------------------------------------------------
    tm = max(8, (min(int(tm), 2048) // 8) * 8)       # cap for v7x 64 MiB VMEM
    rows = _round_up(num, 8)
    if rows <= tm:
        tm = rows                                    # small batch: single tile
    else:
        # Keep >= 2 balanced grid steps (v7x megacore; avoids a tiny tail tile).
        half = _round_up(-(-num // 2), 256)
        tm = min(tm, max(256, half))
    num_pad = _round_up(num, tm)
    if num_pad != num:
        theta = jnp.pad(theta, ((0, num_pad - num), (0, 0)))
    grid_n = num_pad // tm

    out = pl.pallas_call(
        _pose_prior_kernel,
        out_shape=jax.ShapeDtypeStruct((grid_n, 1, tm), jnp.float32),
        grid=(grid_n,),
        in_specs=[
            pl.BlockSpec((tm, theta_dim), lambda i: (i, 0)),      # theta (pipelined)
            pl.BlockSpec((theta_dim, lanes), lambda i: (0, 0)),   # W (resident)
            pl.BlockSpec((1, lanes), lambda i: (0, 0)),           # bias (resident)
            pl.BlockSpec((lanes, LANE), lambda i: (0, 0)),        # selector (resident)
            pl.BlockSpec((1, LANE), lambda i: (0, 0)),            # logweight row (resident)
        ],
        out_specs=pl.BlockSpec((1, 1, tm), lambda i: (i, 0, 0)),  # lane-dense
        compiler_params=pltpu.CompilerParams(
            dimension_semantics=("parallel",),
            vmem_limit_bytes=32 * 1024 * 1024),
    )(theta, W, bias, sel, logw_row)

    return out.reshape(-1)[:num]   # matches .view(-1); drops pad rows


def _reference(theta, means, precs, logweights):
    theta69 = theta[:, PREFIX:]
    delta = SQRT_HALF * (theta69[:, None, :] - means[None, :, :])   # (num, g, p)
    ll = jnp.einsum('ngp,gpq->ngq', delta, precs)                   # (num, g, p)
    results = jnp.sum(ll * ll, axis=-1) - logweights[None, :]       # (num, g)
    return jnp.min(results, axis=-1)


if __name__ == "__main__":
    key = jax.random.PRNGKey(0)
    k_theta, k_means, k_precs, k_logw = jax.random.split(key, 4)

    # Deterministic synthetic "GMM" parameters (module normally loads gmm_data.npz).
    gmm_num, pose_dim = 8, 69
    num = 16
    theta = jax.random.normal(k_theta, (num, 72), dtype=jnp.float32) * 0.2
    means = jax.random.normal(k_means, (gmm_num, pose_dim), dtype=jnp.float32) * 0.1
    precs = jax.random.normal(k_precs, (gmm_num, pose_dim, pose_dim),
                              dtype=jnp.float32) * 0.05
    logweights = jax.nn.log_softmax(
        jax.random.normal(k_logw, (gmm_num,), dtype=jnp.float32))

    # Hoisted constant prep (reused for every call).
    tables = build_pose_prior_tables(means, precs, logweights)

    out = jax.block_until_ready(max_mixture_pose_prior(theta, tables))
    ref = _reference(theta, means, precs, logweights)
    np.testing.assert_allclose(np.asarray(out), np.asarray(ref),
                               rtol=1e-5, atol=1e-5)
    assert out.shape == (num,)

    # Exercise a multi-step grid, a partial trailing tile and the padded
    # lane-major output slice.
    num2 = 20
    theta2 = jax.random.normal(jax.random.PRNGKey(1), (num2, 72),
                               dtype=jnp.float32) * 0.3
    out2 = jax.block_until_ready(
        max_mixture_pose_prior(theta2, tables, tm=8))
    ref2 = _reference(theta2, means, precs, logweights)
    np.testing.assert_allclose(np.asarray(out2), np.asarray(ref2),
                               rtol=1e-5, atol=1e-5)

    print("KERNEL_OK")
</pallas_src>

<mosaic_0001>
module attributes {stable_mosaic.version = 11 : i64} {
  func.func @_pose_prior_kernel(%arg0: i32, %arg1: memref<16x72xf32, #tpu.memory_space<vmem>>, %arg2: memref<72x640xf32, #tpu.memory_space<vmem>>, %arg3: memref<1x640xf32, #tpu.memory_space<vmem>>, %arg4: memref<640x128xf32, #tpu.memory_space<vmem>>, %arg5: memref<1x128xf32, #tpu.memory_space<vmem>>, %arg6: memref<1x1x16xf32, #tpu.memory_space<vmem>>) attributes {dimension_semantics = [#tpu.dimension_semantics<parallel>], iteration_bounds = array<i64: 1>, scalar_prefetch = 0 : i64, scratch_operands = 0 : i64, tpu.core_type = #tpu.core_type<tc>, window_params = [{transform_indices = @transform_0, window_bounds = array<i64: 16, 72>}, {pipeline_mode = #tpu.pipeline_mode<synchronous>, transform_indices = @transform_1, window_bounds = array<i64: 72, 640>}, {pipeline_mode = #tpu.pipeline_mode<synchronous>, transform_indices = @transform_2, window_bounds = array<i64: 1, 640>}, {pipeline_mode = #tpu.pipeline_mode<synchronous>, transform_indices = @transform_3, window_bounds = array<i64: 640, 128>}, {pipeline_mode = #tpu.pipeline_mode<synchronous>, transform_indices = @transform_4, window_bounds = array<i64: 1, 128>}, {transform_indices = @transform_5, window_bounds = array<i64: 1, 1, 16>}]} {
    %c0 = arith.constant 0 : index
    %c0_0 = arith.constant 0 : index
    %0 = vector.load %arg1[%c0, %c0_0] : memref<16x72xf32, #tpu.memory_space<vmem>>, vector<16x72xf32>
    %c0_1 = arith.constant 0 : index
    %c0_2 = arith.constant 0 : index
    %1 = vector.load %arg2[%c0_1, %c0_2] : memref<72x640xf32, #tpu.memory_space<vmem>>, vector<72x640xf32>
    %cst = arith.constant dense<0.000000e+00> : vector<16x640xf32>
    %2 = tpu.matmul %0, %1, %cst {dimension_numbers = #tpu.dot_dimension_numbers<[1], [0], [0], [1], [0, 0, 1, 1], [], []>} : vector<16x72xf32>, vector<72x640xf32>, vector<16x640xf32> -> vector<16x640xf32>
    %c0_3 = arith.constant 0 : index
    %c0_4 = arith.constant 0 : index
    %3 = vector.load %arg3[%c0_3, %c0_4] : memref<1x640xf32, #tpu.memory_space<vmem>>, vector<1x640xf32>
    %4 = vector.broadcast %3 : vector<1x640xf32> to vector<16x640xf32>
    %5 = arith.addf %2, %4 : vector<16x640xf32>
    %6 = arith.mulf %5, %5 : vector<16x640xf32>
    %c0_5 = arith.constant 0 : index
    %c0_6 = arith.constant 0 : index
    %7 = vector.load %arg4[%c0_5, %c0_6] : memref<640x128xf32, #tpu.memory_space<vmem>>, vector<640x128xf32>
    %cst_7 = arith.constant dense<0.000000e+00> : vector<16x128xf32>
    %8 = tpu.matmul %6, %7, %cst_7 {dimension_numbers = #tpu.dot_dimension_numbers<[1], [0], [0], [1], [0, 0, 1, 1], [], []>} : vector<16x640xf32>, vector<640x128xf32>, vector<16x128xf32> -> vector<16x128xf32>
    %c0_8 = arith.constant 0 : index
    %c0_9 = arith.constant 0 : index
    %9 = vector.load %arg5[%c0_8, %c0_9] : memref<1x128xf32, #tpu.memory_space<vmem>>, vector<1x128xf32>
    %10 = vector.broadcast %9 : vector<1x128xf32> to vector<16x128xf32>
    %11 = arith.subf %8, %10 : vector<16x128xf32>
    %cst_10 = arith.constant dense<0x7F800000> : vector<16xf32>
    %12 = vector.multi_reduction <minimumf>, %11, %cst_10 [1] : vector<16x128xf32> to vector<16xf32>
    %13 = vector.shape_cast %12 : vector<16xf32> to vector<16x1xf32>
    %14 = tpu.transpose %13, [1, 0] : vector<16x1xf32> -> vector<1x16xf32>
    %15 = vector.shape_cast %14 : vector<1x16xf32> to vector<1x1x16xf32>
    %c0_11 = arith.constant 0 : index
    %c0_12 = arith.constant 0 : index
    %c0_13 = arith.constant 0 : index
    %16 = vector.load %arg6[%c0_11, %c0_12, %c0_13] : memref<1x1x16xf32, #tpu.memory_space<vmem>>, vector<1x1x16xf32>
    tpu.vector_store %arg6[%c0_11, %c0_12, %c0_13], %15 {strides = array<i32>} : memref<1x1x16xf32, #tpu.memory_space<vmem>>, vector<1x1x16xf32>,
    return
  }
  func.func @transform_0(%arg0: i32) -> (i32, i32) {
    %c0_i32 = arith.constant 0 : i32
    %c0_i32_0 = arith.constant 0 : i32
    return %arg0, %c0_i32 : i32, i32
  }
  func.func @transform_1(%arg0: i32) -> (i32, i32) {
    %c0_i32 = arith.constant 0 : i32
    %c0_i32_0 = arith.constant 0 : i32
    %c0_i32_1 = arith.constant 0 : i32
    return %c0_i32, %c0_i32_0 : i32, i32
  }
  func.func @transform_2(%arg0: i32) -> (i32, i32) {
    %c0_i32 = arith.constant 0 : i32
    %c0_i32_0 = arith.constant 0 : i32
    %c0_i32_1 = arith.constant 0 : i32
    return %c0_i32, %c0_i32_0 : i32, i32
  }
  func.func @transform_3(%arg0: i32) -> (i32, i32) {
    %c0_i32 = arith.constant 0 : i32
    %c0_i32_0 = arith.constant 0 : i32
    %c0_i32_1 = arith.constant 0 : i32
    return %c0_i32, %c0_i32_0 : i32, i32
  }
  func.func @transform_4(%arg0: i32) -> (i32, i32) {
    %c0_i32 = arith.constant 0 : i32
    %c0_i32_0 = arith.constant 0 : i32
    %c0_i32_1 = arith.constant 0 : i32
    return %c0_i32, %c0_i32_0 : i32, i32
  }
  func.func @transform_5(%arg0: i32) -> (i32, i32, i32) {
    %c0_i32 = arith.constant 0 : i32
    %c0_i32_0 = arith.constant 0 : i32
    %c0_i32_1 = arith.constant 0 : i32
    return %arg0, %c0_i32, %c0_i32_0 : i32, i32, i32
  }
}

</mosaic_0001>

<bundles_post_ra>
// kernel: tpu_custom_call.1
= control target key start
LH: loop header
LB: loop body
LE: loop exit
PB: predicated region body
PF: predicated region fallthrough
CT: control target
= control target key end

     0   :  { %10 = vsyncpa [#allocation3], 0  ;;  %s1273_s0 = inlined_call_operand.hbm [shape: f32[16,72], index: 0, kind: input, shape index: {}]   ;;  %s1274_s1 = inlined_call_operand.hbm [shape: f32[72,640], index: 1, kind: input, shape index: {}]   ;;  %s1275_s2 = inlined_call_operand.vmem [shape: f32[1,640], index: 2, kind: input, shape index: {}]   ;;  %s1276_s3 = inlined_call_operand.hbm [shape: f32[640,128], index: 3, kind: input, shape index: {}]   ;;  %s1277_s4 = inlined_call_operand.vmem [shape: f32[1,128], index: 4, kind: input, shape index: {}]   ;;  %s1278_s5 = inlined_call_operand.hbm [shape: f32[1,1,16], index: 5, kind: output, shape index: {}]  }
   0x1   :  { %11 = vsyncpa [#allocation6], 0 }
   0x2   :  { %12 = vsyncpa [#allocation4], 0  ;;  %s1165_s18 = smov [#allocation5]   ;;  %s1071_s22 = scalar_lea.hbm %s1274_s1, 5760 }
   0x3   :  { %s30_s19 = sshll.u32 %s1165_s18, 4  ;;  %p1072_p0 = scmp.ne.s32.totalorder %s1274_s1, %s1071_s22  ;;  %s31_s19 = int_to_ptr.vmem [resolvable:$true] %s30_s19 }
   0x4   :  { %p1075_p1 = scmp.lt.u32.totalorder %s1071_s22, %s1274_s1 }
   0x6   :  { %p1077_p2 = pnand %p1075_p1, %p1072_p0 }
   0x8   :  { %1080 = shalt.err (!%p1077_p2)
}
   0x9   :  { %s1081_s27 = scalar_lea.vmem %s31_s19, 5760  ;;  %p1086_p4 = scmp.lt.s32.totalorder %s31_s19, %s31_s19 }
   0xa   :  { %p1082_p3 = scmp.ne.s32.totalorder %s31_s19, %s1081_s27  ;;  %p1087_p5 = scmp.lt.s32.totalorder %s1081_s27, %s1081_s27 }
   0xc   :  { %p1088_p6 = por %p1087_p5, %p1086_p4 }
   0xe   :  { %p1089_p7 = pnand %p1088_p6, %p1082_p3 }
  0x10   :  { %1092 = shalt.err (!%p1089_p7)
}
  0x11   :  { %s1166_s28 = smov 640   ;;  %s1167_s29 = smov 40  }
  0x12   :  { %36 = dma.hbm_to_vmem [thread:$0]  %s1274_s1, 5760, %s31_s19, [#allocation6], %s1166_s28, %s1166_s28, %s1167_s29  }
  0x13   :  { %s1168_s7 = smov [#allocation2]   ;;  %s1093_s11 = scalar_lea.hbm %s1273_s0, 256 }
  0x14   :  { %s18_s8 = sshll.u32 %s1168_s7, 4  ;;  %p1094_p8 = scmp.ne.s32.totalorder %s1273_s0, %s1093_s11  ;;  %s19_s8 = int_to_ptr.vmem [resolvable:$true] %s18_s8 }
  0x15   :  { %p1097_p9 = scmp.lt.u32.totalorder %s1093_s11, %s1273_s0 }
  0x17   :  { %p1099_p10 = pnand %p1097_p9, %p1094_p8 }
  0x19   :  { %1102 = shalt.err (!%p1099_p10)
}
  0x1a   :  { %s1103_s16 = scalar_lea.vmem %s19_s8, 256  ;;  %p1108_p12 = scmp.lt.s32.totalorder %s19_s8, %s19_s8 }
  0x1b   :  { %p1104_p11 = scmp.ne.s32.totalorder %s19_s8, %s1103_s16  ;;  %p1109_p13 = scmp.lt.s32.totalorder %s1103_s16, %s1103_s16 }
  0x1d   :  { %p1110_p0 = por %p1109_p13, %p1108_p12 }
  0x1f   :  { %p1111_p1 = pnand %p1110_p0, %p1104_p11 }
  0x21   :  { %1114 = shalt.err (!%p1111_p1)
}
  0x22   :  { %s1169_s1 = smov 128   ;;  %s1170_s17 = smov 8  }
  0x23   :  { %24 = dma.hbm_to_vmem [thread:$0]  %s1273_s0, 256, %s19_s8, [#allocation3], %s1169_s1, %s1169_s1, %s1170_s17  }
  0x24   :  { %s1171_s20 = smov [#allocation7]   ;;  %s1115_s24 = scalar_lea.hbm %s1276_s3, 10240 }
  0x25   :  { %s44_s21 = sshll.u32 %s1171_s20, 4  ;;  %p1116_p2 = scmp.ne.s32.totalorder %s1276_s3, %s1115_s24  ;;  %s45_s21 = int_to_ptr.vmem [resolvable:$true] %s44_s21 }
  0x26   :  { %p1119_p3 = scmp.lt.u32.totalorder %s1115_s24, %s1276_s3 }
  0x28   :  { %p1121_p4 = pnand %p1119_p3, %p1116_p2 }
  0x2a   :  { %1124 = shalt.err (!%p1121_p4)
}
  0x2b   :  { %s1125_s29 = scalar_lea.vmem %s45_s21, 10240  ;;  %p1130_p6 = scmp.lt.s32.totalorder %s45_s21, %s45_s21 }
  0x2c   :  { %p1126_p5 = scmp.ne.s32.totalorder %s45_s21, %s1125_s29  ;;  %p1131_p7 = scmp.lt.s32.totalorder %s1125_s29, %s1125_s29 }
  0x2e   :  { %p1132_p8 = por %p1131_p7, %p1130_p6 }
  0x30   :  { %p1133_p9 = pnand %p1132_p8, %p1126_p5 }
  0x32   :  { %1136 = shalt.err (!%p1133_p9)
}
  0x33   :  { %50 = dma.hbm_to_vmem [thread:$0]  %s1276_s3, 10240, %s45_s21, [#allocation6], %s1169_s1, %s1169_s1, %s1170_s17  }
  0x34   :  { %1159 = dma.done.wait [#allocation3], 256  }
  0x35   :  { %1160 = vsyncadd [#allocation3], 4294967040 }
  0x36   :  { %1161 = dma.done.wait [#allocation6], 16000  }
  0x37   :  { %1162 = vsyncadd [#allocation6], 4294951296  ;;  %v1172_v0 = vmov 0.0   ;;  %v65_v1 = vld [vmem:[#allocation5 + $0x8] sm:$0xff]  ;;  %v70_v2 = vld [vmem:[#allocation5 + $0x30] sm:$0xff]  ;;  %vm136_vm0 = vcmask 588800  }
  0x38   :  { %207 = vmatprep.mubr.f32.mxu0 %v1172_v0  ;;  %284 = vmatprep.mubr.f32.mxu1 %v1172_v0  ;;  %v67_v3 = vld [vmem:[#allocation5 + $0x18] sm:$0xff]  ;;  %v918_v4 = vpack.c.bf16 %v70_v2, %v65_v1  ;;  %v72_v5 = vld [vmem:[#allocation5 + $0x40] sm:$0xff]  ;;  %v69_v7 = vld [vmem:[#allocation5 + $0x28] sm:$0xff]  ;;  %s1173_s8 = smov [#allocation8]   ;;  %vm732_vm1 = vcmask 122880  }
  0x39   :  { %v64_v6 = vld [vmem:[#allocation5] sm:$0xff]  ;;  %v934_v8 = vpack.c.bf16 %v72_v5, %v67_v3  ;;  %v66_v10 = vld [vmem:[#allocation5 + $0x10] sm:$0xff]  ;;  %v71_v11 = vld [vmem:[#allocation5 + $0x38] sm:$0xff]  ;;  %s740_s9 = sshll.u32 %s1173_s8, 4  ;;  %s741_s9 = int_to_ptr.vmem [resolvable:$true] %s740_s9 }
  0x3a   :  { %v920_v9 = vpack.c.bf16 %v69_v7, %v64_v6  ;;  %v75_v12 = vld [vmem:[#allocation5 + $0x58] sm:$0xff]  ;;  %919 = vmatprep.subr.bf16.mxu0 %v918_v4  ;;  %v936_v13 = vpack.c.bf16 %v71_v11, %v66_v10  ;;  %v80_v14 = vld [vmem:[#allocation5 + $0x80] sm:$0xff]  ;;  %v77_v15 = vld [vmem:[#allocation5 + $0x68] sm:$0xff]  ;;  %s1137_s10 = scalar_lea.vmem %s741_s9, 16  ;;  %s1141_s11 = scalar_lea.vmem %s741_s9, 32 }
  0x3b   :  { %v82_v16 = vld [vmem:[#allocation5 + $0x90] sm:$0xff]  ;;  %935 = vmatprep.subr.bf16.mxu1 %v934_v8  ;;  %v922_v17 = vpack.c.bf16 %v80_v14, %v75_v12  ;;  %v79_v20 = vld [vmem:[#allocation5 + $0x78] sm:$0xff]  ;;  %v76_v21 = vld [vmem:[#allocation5 + $0x60] sm:$0xff]  ;;  %p1138_p10 = scmp.ne.s32.totalorder %s741_s9, %s1137_s10  ;;  %p1142_p11 = scmp.lt.s32.totalorder %s741_s9, %s741_s9 }
  0x3c   :  { %921 = vmatpush1.bf16.msra.mxu0 %v920_v9  ;;  %v938_v18 = vpack.c.bf16 %v82_v16, %v77_v15  ;;  %v74_v19 = vld [vmem:[#allocation5 + $0x50] sm:$0xff]  ;;  %937 = vmatpush1.bf16.msra.mxu1 %v936_v13  ;;  %v81_v23 = vld [vmem:[#allocation5 + $0x88] sm:$0xff]  ;;  %v87_v28 = vld [vmem:[#allocation5 + $0xb8] sm:$0xff]  ;;  %p1143_p12 = scmp.lt.s32.totalorder %s1141_s11, %s1137_s10 }
  0x3d   :  { %v924_v22 = vpack.c.bf16 %v79_v20, %v74_v19  ;;  %v85_v24 = vld [vmem:[#allocation5 + $0xa8] sm:$0xff]  ;;  %v90_v25 = vld [vmem:[#allocation5 + $0xd0] sm:$0xff]  ;;  %923 = vmatprep.subr.bf16.mxu0 %v922_v17  ;;  %v940_v26 = vpack.c.bf16 %v81_v23, %v76_v21  ;;  %v92_v29 = vld [vmem:[#allocation5 + $0xe0] sm:$0xff] }
  0x3e   :  { %939 = vmatprep.subr.bf16.mxu1 %v938_v18  ;;  %v926_v27 = vpack.c.bf16 %v90_v25, %v85_v24  ;;  %v84_v30 = vld [vmem:[#allocation5 + $0xa0] sm:$0xff]  ;;  %v942_v31 = vpack.c.bf16 %v92_v29, %v87_v28  ;;  %v89_v32 = vld [vmem:[#allocation5 + $0xc8] sm:$0xff]  ;;  %v86_v33 = vld [vmem:[#allocation5 + $0xb0] sm:$0xff]  ;;  %p1144_p13 = por %p1143_p12, %p1142_p11 }
  0x3f   :  { %v91_v34 = vld [vmem:[#allocation5 + $0xd8] sm:$0xff]  ;;  %v928_v35 = vpack.c.bf16 %v89_v32, %v84_v30  ;;  %v100_v37 = vld [vmem:[#allocation5 + $0x120] sm:$0xff]  ;;  %v97_v38 = vld [vmem:[#allocation5 + $0x108] sm:$0xff] }
  0x40   :  { %925 = vmatpush1.bf16.msra.mxu0 %v924_v22  ;;  %v95_v36 = vld [vmem:[#allocation5 + $0xf8] sm:$0xff]  ;;  %941 = vmatpush1.bf16.msra.mxu1 %v940_v26  ;;  %v944_v39 = vpack.c.bf16 %v91_v34, %v86_v33  ;;  %v102_v41 = vld [vmem:[#allocation5 + $0x130] sm:$0xff]  ;;  %v96_v45 = vld [vmem:[#allocation5 + $0x100] sm:$0xff]  ;;  %p1145_p0 = pnand %p1144_p13, %p1138_p10 }
  0x41   :  { %927 = vmatprep.subr.bf16.mxu0 %v926_v27  ;;  %v930_v40 = vpack.c.bf16 %v100_v37, %v95_v36  ;;  %v94_v42 = vld [vmem:[#allocation5 + $0xf0] sm:$0xff]  ;;  %v99_v43 = vld [vmem:[#allocation5 + $0x118] sm:$0xff]  ;;  %943 = vmatprep.subr.bf16.mxu1 %v942_v31  ;;  %v946_v44 = vpack.c.bf16 %v102_v41, %v97_v38  ;;  %v101_v46 = vld [vmem:[#allocation5 + $0x128] sm:$0xff] }
  0x42   :  { %v932_v47 = vpack.c.bf16 %v99_v43, %v94_v42  ;;  %v948_v48 = vpack.c.bf16 %v101_v46, %v96_v45  ;;  %v105_v49 = vld [vmem:[#allocation5 + $0x148] sm:$0xff]  ;;  %v107_v50 = vld [vmem:[#allocation5 + $0x158] sm:$0xff]  ;;  %v68_v51 = vld [vmem:[#allocation5 + $0x20] sm:$0xff] }
  0x43   :  { %v73_v52 = vld [vmem:[#allocation5 + $0x48] sm:$0xff]  ;;  %v104_v53 = vld [vmem:[#allocation5 + $0x140] sm:$0xff]  ;;  %v106_v54 = vld [vmem:[#allocation5 + $0x150] sm:$0xff] }
  0x44   :  { %929 = vmatpush1.bf16.msra.mxu0 %v928_v35  ;;  %945 = vmatpush1.bf16.msra.mxu1 %v944_v39  ;;  %v78_v55 = vld [vmem:[#allocation5 + $0x70] sm:$0xff]  ;;  %v83_v56 = vld [vmem:[#allocation5 + $0x98] sm:$0xff]  ;;  %v950_v58 = vpack.c.bf16 %v73_v52, %v68_v51  ;;  %v398_v59 = vld [vmem:[#allocation7 + $0x80] sm:$0xff] }
  0x45   :  { %931 = vmatprep.subr.bf16.mxu0 %v930_v40  ;;  %947 = vmatprep.subr.bf16.mxu1 %v946_v44  ;;  %v62_v57 = vld [vmem:[#allocation2] sm:$0xff]  ;;  %v954_v61 = vpack.c.bf16 %v83_v56, %v78_v55  ;;  %v88_v62 = vld [vmem:[#allocation5 + $0xc0] sm:$0xff]  ;;  %v382_v63 = vld [vmem:[#allocation7] sm:$0xff] }
  0x46   :  { %v399_v60 = vld [vmem:[#allocation7 + $0x88] sm:$0xff]  ;;  %v93_v2 = vld [vmem:[#allocation5 + $0xe8] sm:$0xff]  ;;  %v400_v4 = vld [vmem:[#allocation7 + $0x90] sm:$0xff] }
  0x47   :  { %v383_v1 = vld [vmem:[#allocation7 + $0x8] sm:$0xff]  ;;  %v966_v3 = vpack.c.bf16 %v399_v60, %v398_v59  ;;  %v401_v5 = vld [vmem:[#allocation7 + $0x98] sm:$0xff]  ;;  %v1244_v6 = vld [vmem:[#allocation2 + $0x8] sm:$0xff]  ;;  %v958_v8 = vpack.c.bf16 %v93_v2, %v88_v62 }
  0x48   :  { %933 = vmatpush1.bf16.msra.mxu0 %v932_v47  ;;  %949 = vmatpush1.bf16.msra.mxu1 %v948_v48  ;;  %v968_v7 = vpack.c.bf16 %v383_v1, %v382_v63  ;;  %v98_v9 = vld [vmem:[#allocation5 + $0x110] sm:$0xff]  ;;  %v970_v10 = vpack.c.bf16 %v401_v5, %v400_v4  ;;  %v384_v11 = vld [vmem:[#allocation7 + $0x10] sm:$0xff]  ;;  %v385_v12 = vld [vmem:[#allocation7 + $0x18] sm:$0xff] }
  0x49   :  { %159 = vmatprep.subr.mxu0 %v105_v49  ;;  %236 = vmatprep.subr.mxu1 %v107_v50  ;;  %v103_v13 = vld [vmem:[#allocation5 + $0x138] sm:$0xff]  ;;  %v402_v14 = vld [vmem:[#allocation7 + $0xa0] sm:$0xff]  ;;  %v403_v15 = vld [vmem:[#allocation7 + $0xa8] sm:$0xff]  ;;  %v972_v16 = vpack.c.bf16 %v385_v12, %v384_v11 }
  0x4a   :  { %v974_v17 = vpack.c.bf16 %v403_v15, %v402_v14  ;;  %v386_v18 = vld [vmem:[#allocation7 + $0x20] sm:$0xff]  ;;  %v387_v19 = vld [vmem:[#allocation7 + $0x28] sm:$0xff]  ;;  %v404_v20 = vld [vmem:[#allocation7 + $0xb0] sm:$0xff] }
  0x4b   :  { %v405_v21 = vld [vmem:[#allocation7 + $0xb8] sm:$0xff]  ;;  %v976_v22 = vpack.c.bf16 %v387_v19, %v386_v18  ;;  %v388_v25 = vld [vmem:[#allocation7 + $0x30] sm:$0xff]  ;;  %v430_v27 = vld [vmem:[#allocation7 + $0x180] sm:$0xff] }
  0x4c   :  { %160 = vmatpush1.msra.mxu0 %v104_v53  ;;  %237 = vmatpush1.msra.mxu1 %v106_v54  ;;  %v108_v23 = vld [vmem:[#allocation5 + $0x160] sm:$0xff]  ;;  %v978_v24 = vpack.c.bf16 %v405_v21, %v404_v20  ;;  %v431_v28 = vld [vmem:[#allocation7 + $0x188] sm:$0xff]  ;;  %v414_v29 = vld [vmem:[#allocation7 + $0x100] sm:$0xff] }
  0x4d   :  { %750 = vmatmul.mubr.msk.f32.vlgmr.msra.gmra.mrb[0].mxu0 %vm136_vm0, %v62_v57  ;;  %752 = vmatmul.mubr.msk.f32.vlgmr.msra.gmra.mrb[0].mxu1 %vm136_vm0, %v62_v57  ;;  %v389_v26 = vld [vmem:[#allocation7 + $0x38] sm:$0xff]  ;;  %v415_v30 = vld [vmem:[#allocation7 + $0x108] sm:$0xff]  ;;  %v406_v31 = vld [vmem:[#allocation7 + $0xc0] sm:$0xff]  ;;  %v998_v36 = vpack.c.bf16 %v431_v28, %v430_v27 }
  0x4e   :  { %951 = vmatprep.subr.bf16.mxu0 %v950_v58  ;;  %213 = vmatprep.mubr.f32.mxu0 %v1172_v0  ;;  %v407_v32 = vld [vmem:[#allocation7 + $0xc8] sm:$0xff]  ;;  %v432_v33 = vld [vmem:[#allocation7 + $0x190] sm:$0xff]  ;;  %v433_v34 = vld [vmem:[#allocation7 + $0x198] sm:$0xff]  ;;  %v980_v35 = vpack.c.bf16 %v389_v26, %v388_v25  ;;  %v1000_v39 = vpack.c.bf16 %v415_v30, %v414_v29 }
  0x4f   :  { %953 = vmatpush3.bf16.msra.mxu0 %v950_v58  ;;  %290 = vmatprep.mubr.f32.mxu1 %v1172_v0  ;;  %v962_v0 = vpack.c.bf16 %v103_v13, %v98_v9  ;;  %v390_v37 = vld [vmem:[#allocation7 + $0x40] sm:$0xff]  ;;  %v391_v38 = vld [vmem:[#allocation7 + $0x48] sm:$0xff]  ;;  %v982_v40 = vpack.c.bf16 %v407_v32, %v406_v31  ;;  %v408_v41 = vld [vmem:[#allocation7 + $0xd0] sm:$0xff]  ;;  %v1002_v43 = vpack.c.bf16 %v433_v34, %v432_v33 }
  0x50   :  { %955 = vmatprep.subr.bf16.mxu0 %v954_v61  ;;  %967 = vmatprep.subr.bf16.mxu1 %v966_v3  ;;  %v409_v42 = vld [vmem:[#allocation7 + $0xd8] sm:$0xff]  ;;  %v416_v44 = vld [vmem:[#allocation7 + $0x110] sm:$0xff]  ;;  %v434_v46 = vld [vmem:[#allocation7 + $0x1a0] sm:$0xff]  ;;  %v984_v48 = vpack.c.bf16 %v391_v38, %v390_v37 }
  0x51   :  { %751 = vmatmul.mubr.msk.f32.gmra.mrb[2].mxu0 %vm136_vm0, %v1244_v6  ;;  %753 = vmatmul.mubr.msk.f32.gmra.mrb[2].mxu1 %vm136_vm0, %v1244_v6  ;;  %v417_v45 = vld [vmem:[#allocation7 + $0x118] sm:$0xff]  ;;  %v435_v47 = vld [vmem:[#allocation7 + $0x1a8] sm:$0xff]  ;;  %v986_v49 = vpack.c.bf16 %v409_v42, %v408_v41  ;;  %v392_v50 = vld [vmem:[#allocation7 + $0x50] sm:$0xff] }
  0x52   :  { %880 = vmatprep.mubr.msk.f32.mxu0 %vm136_vm0, %v62_v57  ;;  %969 = vmatpush3.bf16.msra.mxu1 %v968_v7  ;;  %v393_v51 = vld [vmem:[#allocation7 + $0x58] sm:$0xff]  ;;  %v1004_v52 = vpack.c.bf16 %v417_v45, %v416_v44  ;;  %v410_v53 = vld [vmem:[#allocation7 + $0xe0] sm:$0xff]  ;;  %v411_v54 = vld [vmem:[#allocation7 + $0xe8] sm:$0xff]  ;;  %v1006_v55 = vpack.c.bf16 %v435_v47, %v434_v46 }
  0x53   :  { %957 = vmatpush3.bf16.msra.mxu0 %v954_v61  ;;  %971 = vmatprep.subr.bf16.mxu1 %v970_v10  ;;  %v418_v56 = vld [vmem:[#allocation7 + $0x120] sm:$0xff]  ;;  %v419_v57 = vld [vmem:[#allocation7 + $0x128] sm:$0xff]  ;;  %v436_v58 = vld [vmem:[#allocation7 + $0x1b0] sm:$0xff]  ;;  %v988_v60 = vpack.c.bf16 %v393_v51, %v392_v50  ;;  %v990_v61 = vpack.c.bf16 %v411_v54, %v410_v53 }
  0x54   :  { %959 = vmatprep.subr.bf16.mxu0 %v958_v8  ;;  %v437_v59 = vld [vmem:[#allocation7 + $0x1b8] sm:$0xff]  ;;  %v394_v62 = vld [vmem:[#allocation7 + $0x60] sm:$0xff]  ;;  %v395_v63 = vld [vmem:[#allocation7 + $0x68] sm:$0xff]  ;;  %v1008_v1 = vpack.c.bf16 %v419_v57, %v418_v56 }
  0x55   :  { %v1010_v2 = vpack.c.bf16 %v437_v59, %v436_v58  ;;  %v420_v3 = vld [vmem:[#allocation7 + $0x130] sm:$0xff]  ;;  %v421_v4 = vld [vmem:[#allocation7 + $0x138] sm:$0xff]  ;;  %v438_v5 = vld [vmem:[#allocation7 + $0x1c0] sm:$0xff]  ;;  %v992_v7 = vpack.c.bf16 %v395_v63, %v394_v62 }
  0x56   :  { %973 = vmatpush3.bf16.msra.mxu1 %v972_v16  ;;  %v422_v10 = vld [vmem:[#allocation7 + $0x140] sm:$0xff]  ;;  %v423_v11 = vld [vmem:[#allocation7 + $0x148] sm:$0xff]  ;;  %v440_v12 = vld [vmem:[#allocation7 + $0x1d0] sm:$0xff] }
  0x57   :  { %961 = vmatpush3.bf16.msra.mxu0 %v958_v8  ;;  %975 = vmatprep.subr.bf16.mxu1 %v974_v17  ;;  %v1012_v8 = vpack.c.bf16 %v421_v4, %v420_v3  ;;  %v441_v13 = vld [vmem:[#allocation7 + $0x1d8] sm:$0xff]  ;;  %v1016_v14 = vpack.c.bf16 %v423_v11, %v422_v10  ;;  %v424_v16 = vld [vmem:[#allocation7 + $0x150] sm:$0xff]  ;;  %v442_v17 = vld [vmem:[#allocation7 + $0x1e0] sm:$0xff] }
  0x58   :  { %963 = vmatprep.subr.bf16.mxu0 %v962_v0  ;;  %v1018_v15 = vpack.c.bf16 %v441_v13, %v440_v12  ;;  %v443_v18 = vld [vmem:[#allocation7 + $0x1e8] sm:$0xff]  ;;  %v426_v21 = vld [vmem:[#allocation7 + $0x160] sm:$0xff]  ;;  %v413_v25 = vld [vmem:[#allocation7 + $0xf8] sm:$0xff] }
  0x59   :  { %v1022_v20 = vpack.c.bf16 %v443_v18, %v442_v17  ;;  %v396_v27 = vld [vmem:[#allocation7 + $0x70] sm:$0xff]  ;;  %v397_v28 = vld [vmem:[#allocation7 + $0x78] sm:$0xff]  ;;  %v447_v37 = vld [vmem:[#allocation7 + $0x208] sm:$0xff] }
  0x5a   :  { %977 = vmatpush3.bf16.msra.mxu1 %v976_v22  ;;  %v427_v22 = vld [vmem:[#allocation7 + $0x168] sm:$0xff]  ;;  %v444_v29 = vld [vmem:[#allocation7 + $0x1f0] sm:$0xff]  ;;  %v996_v30 = vpack.c.bf16 %v397_v28, %v396_v27  ;;  %v445_v31 = vld [vmem:[#allocation7 + $0x1f8] sm:$0xff] }
  0x5b   :  { %965 = vmatpush3.bf16.msra.mxu0 %v962_v0  ;;  %979 = vmatprep.subr.bf16.mxu1 %v978_v24  ;;  %v425_v0 = vld [vmem:[#allocation7 + $0x158] sm:$0xff]  ;;  %v412_v24 = vld [vmem:[#allocation7 + $0xf0] sm:$0xff]  ;;  %v1026_v34 = vpack.c.bf16 %v445_v31, %v444_v29  ;;  %v109_v42 = vld [vmem:[%s1275_s2] sm:$0x1f] }
  0x5c   :  { %878 = vmatprep.subr.mxu0 %v108_v23  ;;  %v1020_v19 = vpack.c.bf16 %v425_v0, %v424_v16  ;;  %v994_v26 = vpack.c.bf16 %v413_v25, %v412_v24  ;;  %v428_v32 = vld [vmem:[#allocation7 + $0x170] sm:$0xff]  ;;  %v429_v33 = vld [vmem:[#allocation7 + $0x178] sm:$0xff]  ;;  %v459_v31 = vld [vmem:[#allocation7 + $0x268] sm:$0xff] }
  0x5d   :  { %v448_v57 = vld [vmem:[#allocation7 + $0x210] sm:$0xff]  ;;  %v449_v58 = vld [vmem:[#allocation7 + $0x218] sm:$0xff] }
  0x5e   :  { %981 = vmatpush3.bf16.msra.mxu1 %v980_v35  ;;  %v1028_v35 = vpack.c.bf16 %v429_v33, %v428_v32  ;;  %v452_v0 = vld [vmem:[#allocation7 + $0x230] sm:$0xff]  ;;  %v453_v17 = vld [vmem:[#allocation7 + $0x238] sm:$0xff] }
  0x5f   :  { %879 = vmatpush3.msra.mxu0 %v108_v23  ;;  %983 = vmatprep.subr.bf16.mxu1 %v982_v40  ;;  %v1024_v23 = vpack.c.bf16 %v427_v22, %v426_v21  ;;  %v1042_v18 = vpack.c.bf16 %v453_v17, %v452_v0  ;;  %v455_v21 = vld [vmem:[#allocation7 + $0x248] sm:$0xff]  ;;  %v456_v24 = vld [vmem:[#allocation7 + $0x250] sm:$0xff]  ;;  %v457_v25 = vld [vmem:[#allocation7 + $0x258] sm:$0xff] }
  0x60   :  { %881 = vmatmul.mubr.msk.f32.vlgmr.msra.gmra.mrb[4].mxu0 %vm136_vm0, %v1244_v6  ;;  %999 = vmatprep.subr.bf16.mxu0 %v998_v36  ;;  %v439_v6 = vld [vmem:[#allocation7 + $0x1c8] sm:$0xff]  ;;  %v446_v36 = vld [vmem:[#allocation7 + $0x200] sm:$0xff]  ;;  %v1050_v28 = vpack.c.bf16 %v457_v25, %v456_v24 }
  0x61   :  { %1001 = vmatpush3.bf16.msra.mxu0 %v1000_v39  ;;  %v1014_v9 = vpack.c.bf16 %v439_v6, %v438_v5  ;;  %v1030_v38 = vpack.c.bf16 %v447_v37, %v446_v36  ;;  %v111_v39 = vlaneseq  ;;  %v450_v6 = vld [vmem:[#allocation7 + $0x220] sm:$0xff] }
  0x62   :  { %1003 = vmatprep.subr.bf16.mxu0 %v1002_v43  ;;  %985 = vmatpush3.bf16.msra.mxu1 %v984_v48 }
  0x63   :  { %987 = vmatprep.subr.bf16.mxu1 %v986_v49  ;;  %v112_v40 = vshrl.u32 %v111_v39, 7 }
  0x65   :  { %1005 = vmatpush3.bf16.msra.mxu0 %v1004_v52  ;;  %v113_v41 = vsub.s32 0, %v112_v40  ;;  %v121_v43 = vsub.s32 2, %v112_v40  ;;  %v117_v44 = vsub.s32 1, %v112_v40  ;;  %v125_v45 = vsub.s32 3, %v112_v40 }
  0x66   :  { %1007 = vmatprep.subr.bf16.mxu0 %v1006_v55  ;;  %989 = vmatpush3.bf16.msra.mxu1 %v988_v60 }
  0x67   :  { %991 = vmatprep.subr.bf16.mxu1 %v990_v61  ;;  %v114_v46 = vrot.slane %v109_v42, %v113_v41  ;;  %v122_v47 = vrot.slane %v109_v42, %v121_v43  ;;  %v118_v48 = vrot.slane %v109_v42, %v117_v44  ;;  %v126_v49 = vrot.slane %v109_v42, %v125_v45 }
  0x69   :  { %1009 = vmatpush3.bf16.msra.mxu0 %v1008_v1 }
  0x6a   :  { %1011 = vmatprep.subr.bf16.mxu0 %v1010_v2  ;;  %993 = vmatpush3.bf16.msra.mxu1 %v992_v7  ;;  %v1034_v2 = vpack.c.bf16 %v449_v58, %v448_v57  ;;  %v451_v7 = vld [vmem:[#allocation7 + $0x228] sm:$0xff] }
  0x6b   :  { %995 = vmatprep.subr.bf16.mxu1 %v994_v26 }
  0x6d   :  { %1013 = vmatpush3.bf16.msra.mxu0 %v1012_v8 }
  0x6e   :  { %1015 = vmatprep.subr.bf16.mxu0 %v1014_v9  ;;  %997 = vmatpush3.bf16.msra.mxu1 %v996_v30  ;;  %v458_v30 = vld [vmem:[#allocation7 + $0x260] sm:$0xff] }
  0x6f   :  { %1031 = vmatprep.subr.bf16.mxu1 %v1030_v38  ;;  %v1054_v33 = vpack.c.bf16 %v459_v31, %v458_v30 }
  0x71   :  { %1017 = vmatpush3.bf16.msra.mxu0 %v1016_v14 }
  0x72   :  { %1019 = vmatprep.subr.bf16.mxu0 %v1018_v15  ;;  %v1038_v15 = vpack.c.bf16 %v451_v7, %v450_v6 }
  0x75   :  { %1021 = vmatpush3.bf16.msra.mxu0 %v1020_v19  ;;  %v129_v19 = vsub.s32 4, %v112_v40 }
  0x76   :  { %1023 = vmatprep.subr.bf16.mxu0 %v1022_v20  ;;  %v454_v20 = vld [vmem:[#allocation7 + $0x240] sm:$0xff] }
  0x77   :  { %v1046_v22 = vpack.c.bf16 %v455_v21, %v454_v20 }
  0x79   :  { %1025 = vmatpush3.bf16.msra.mxu0 %v1024_v23  ;;  %v130_v23 = vrot.slane %v109_v42, %v129_v19 }
  0x7a   :  { %1027 = vmatprep.subr.bf16.mxu0 %v1026_v34  ;;  %v460_v34 = vld [vmem:[#allocation7 + $0x270] sm:$0xff] }
  0x7d   :  { %1029 = vmatpush3.bf16.msra.mxu0 %v1028_v35  ;;  %v461_v35 = vld [vmem:[#allocation7 + $0x278] sm:$0xff] }
  0x7e   :  { %v1058_v36 = vpack.c.bf16 %v461_v35, %v460_v34 }
 0x120   :  { %v209_v50 = vpop.f32.mrb[0].mxu0  ;;  %v286_v52 = vpop.f32.mrb[0].mxu1 }
 0x121   :  { %v210_v51 = vadd.f32 %v209_v50, %v114_v46  ;;  %v211_v53 = vpop.f32.mrb[1].mxu0  ;;  %v287_v54 = vadd.f32 %v286_v52, %v122_v47  ;;  %v288_v56 = vpop.f32.mrb[1].mxu1 }
 0x122   :  { %v212_v55 = vadd.f32 %v211_v53, %v118_v48  ;;  %v289_v59 = vadd.f32 %v288_v56, %v126_v49  ;;  %v756_v56 = vld [vmem:[%s1277_s4] ss:$0 sm:$0xff] }
 0x123   :  { %v374_v60 = vmul.f32 %v287_v54, %v287_v54  ;;  %v372_v63 = vmul.f32 %v210_v51, %v210_v51 }
 0x124   :  { %v373_v61 = vmul.f32 %v212_v55, %v212_v55  ;;  %v215_v62 = vpop.f32.mrb[2].mxu0  ;;  %v375_v1 = vmul.f32 %v289_v59, %v289_v59  ;;  %v292_v4 = vpop.f32.mrb[2].mxu1 }
 0x125   :  { %v216_v3 = vadd.f32 %v215_v62, %v114_v46  ;;  %v217_v5 = vpop.f32.mrb[3].mxu0  ;;  %v293_v8 = vadd.f32 %v292_v4, %v122_v47  ;;  %v294_v10 = vpop.f32.mrb[3].mxu1 }
 0x126   :  { %526 = vmatprep.mubr.f32.mxu1 %v373_v61  ;;  %v218_v9 = vadd.f32 %v217_v5, %v118_v48  ;;  %601 = vmatprep.mubr.f32.mxu0 %v375_v1  ;;  %v295_v12 = vadd.f32 %v294_v10, %v126_v49 }
 0x127   :  { %527 = vmatmul.mubr.f32.vlgmr.msra.gmra.mrb[4].mxu1 %v372_v63  ;;  %v377_v11 = vmul.f32 %v216_v3, %v216_v3  ;;  %602 = vmatmul.mubr.f32.vlgmr.msra.gmra.mrb[6].mxu0 %v374_v60  ;;  %v379_v13 = vmul.f32 %v293_v8, %v293_v8 }
 0x128   :  { %1033 = vmatpush3.bf16.msra.mxu1 %v1030_v38  ;;  %v378_v14 = vmul.f32 %v218_v9, %v218_v9  ;;  %v380_v16 = vmul.f32 %v295_v12, %v295_v12 }
 0x129   :  { %1035 = vmatprep.subr.bf16.mxu1 %v1034_v2 }
 0x12a   :  { %531 = vmatprep.mubr.f32.mxu1 %v378_v14  ;;  %606 = vmatprep.mubr.f32.mxu0 %v380_v16 }
 0x12b   :  { %532 = vmatmul.mubr.f32.gmra.mrb[6].mxu1 %v377_v11  ;;  %607 = vmatmul.mubr.f32.gmra.mrb[8].mxu0 %v379_v13 }
 0x12c   :  { %1037 = vmatpush3.bf16.msra.mxu1 %v1034_v2 }
 0x12d   :  { %1039 = vmatprep.subr.bf16.mxu1 %v1038_v15 }
 0x130   :  { %1041 = vmatpush3.bf16.msra.mxu1 %v1038_v15 }
 0x131   :  { %1043 = vmatprep.subr.bf16.mxu1 %v1042_v18 }
 0x133   :  { %v882_v26 = vpop.f32.mrb[4].mxu0 }
 0x134   :  { %1045 = vmatpush3.bf16.msra.mxu1 %v1042_v18  ;;  %v363_v27 = vpop.f32.mrb[5].mxu0  ;;  %v369_v37 = vadd.f32 %v882_v26, %v130_v23 }
 0x135   :  { %1047 = vmatprep.subr.bf16.mxu1 %v1046_v22  ;;  %v364_v29 = vadd.f32 %v363_v27, %v130_v23 }
 0x136   :  { %v381_v38 = vmul.f32 %v369_v37, %v369_v37 }
 0x137   :  { %v376_v32 = vmul.f32 %v364_v29, %v364_v29 }
 0x138   :  { %1049 = vmatpush3.bf16.msra.mxu1 %v1046_v22 }
 0x139   :  { %1051 = vmatprep.subr.bf16.mxu1 %v1050_v28  ;;  %915 = vmatprep.mubr.f32.mxu1 %v376_v32 }
 0x13c   :  { %1053 = vmatpush3.bf16.msra.mxu1 %v1050_v28 }
 0x13d   :  { %1055 = vmatprep.subr.bf16.mxu1 %v1054_v33 }
 0x140   :  { %1057 = vmatpush3.bf16.msra.mxu1 %v1054_v33 }
 0x141   :  { %1059 = vmatprep.subr.bf16.mxu1 %v1058_v36 }
 0x144   :  { %1061 = vmatpush3.bf16.msra.mxu1 %v1058_v36 }
 0x147   :  { %916 = vmatmul.mubr.f32.vlgmr.msra.gmra.mrb[8].mxu1 %v381_v38 }
 0x1fa   :  { %v800_v39 = vpop.f32.mrb[4].mxu1  ;;  %v838_v40 = vpop.f32.mrb[6].mxu0 }
 0x1fb   :  { %v801_v41 = vpop.f32.mrb[5].mxu1  ;;  %v839_v43 = vpop.f32.mrb[7].mxu0 }
 0x1fc   :  { %v802_v42 = vadd.f32 %v801_v41, %v800_v39  ;;  %v840_v44 = vadd.f32 %v839_v43, %v838_v40 }
 0x1fe   :  { %v803_v45 = vpop.f32.mrb[6].mxu1  ;;  %v841_v46 = vpop.f32.mrb[8].mxu0  ;;  %v604_v48 = vadd.f32 %v840_v44, %v802_v42 }
 0x1ff   :  { %v804_v47 = vpop.f32.mrb[7].mxu1  ;;  %v842_v50 = vpop.f32.mrb[9].mxu0 }
 0x200   :  { %v805_v49 = vadd.f32 %v804_v47, %v803_v45  ;;  %v843_v51 = vadd.f32 %v842_v50, %v841_v46 }
 0x202   :  { %v609_v52 = vadd.f32 %v843_v51, %v805_v49 }
 0x21a   :  { %v917_v53 = vpop.f32.mrb[8].mxu1 }
 0x21b   :  { %v684_v54 = vadd.f32 %v917_v53, %v609_v52  ;;  %v678_v55 = vpop.f32.mrb[9].mxu1 }
 0x21c   :  { %v679_v57 = vadd.f32 %v678_v55, %v604_v48 }
 0x21d   :  { %v695_v59 = vsub.f32 %v684_v54, %v756_v56 }
 0x21e   :  { %v694_v58 = vsub.f32 %v679_v57, %v756_v56 }
 0x220   :  { %696 = vmin.xlane.f32.xlu0 %v694_v58 }
 0x224   :  { %698 = vmin.xlane.f32.xlu0 %v695_v59 }
 0x2ad   :  { %v697_v60 = vpop.xlane.xlu0 %696 }
 0x2ae   :  { %700 = vxpose.xlu1.b32.start [1/2] (short) (narrow) %v697_v60, 8 }
 0x2b1   :  { %v699_v61 = vpop.xlane.xlu0 %698 }
 0x2b2   :  { %701 = vxpose.xlu1.b32.end [2/2] (short) (narrow) %v699_v61, 8 }
 0x32e   :  { %v716_v62 = vpop.trf.xlu1 }
 0x32f   :  { %733 = vst.msk [vmem:[#allocation8] sm:$0x1] %vm732_vm1, %v716_v62 }
 0x330   :  { %1148 = shalt.err (!%p1145_p0)
}
 0x331   :  { %s1149_s13 = scalar_lea.hbm %s1278_s5, 16 }
 0x332   :  { %p1150_p1 = scmp.ne.s32.totalorder %s1278_s5, %s1149_s13  ;;  %p1153_p2 = scmp.lt.u32.totalorder %s1149_s13, %s1278_s5 }
 0x334   :  { %p1155_p3 = pnand %p1153_p2, %p1150_p1 }
 0x336   :  { %1158 = shalt.err (!%p1155_p3)
}
 0x337   :  { %743 = dma.vmem_to_hbm [thread:$0]  %s741_s9, 16, %s1278_s5, [#allocation4]  }
 0x338   :  { %1163 = dma.done.wait [#allocation4], 16  }
 0x339   :  { %1164 = vsyncadd [#allocation4], 4294967280 }
 0x33a   :  { %747 = vsyncpa [#allocation3], 1 }
 0x33b   :  { %748 = vsyncpa [#allocation6], 1 }
 0x33c   :  { %749 = vsyncpa [#allocation4], 1 }

</bundles_post_ra>
